<compile_context>
chip_gen: v6e
topology: v6e:2x2x1
jax: 0.10.0
libtpu: 0.0.40
codegen_flags: <defaults>
</compile_context>

<pallas_src>
import functools

import jax
import jax.numpy as jnp
from jax.experimental import pallas as pl
from jax.experimental.pallas import tpu as pltpu


# ----------------------------------------------------------------------------
# Pallas kernels
# ----------------------------------------------------------------------------

def _layernorm_val(x, gamma, beta, eps=1e-5):
    mu = jnp.mean(x, axis=-1, keepdims=True)
    var = jnp.mean((x - mu) ** 2, axis=-1, keepdims=True)
    return (x - mu) * jax.lax.rsqrt(var + eps) * gamma + beta


def _encoder_attn_kernel(cat_ref, num_ref, pos_ref, mask_ref, sel_ref,
                         wcat_ref, bcat_ref,
                         wnum_ref, bnum_ref, gnum_ref, btnum_ref, nplace_ref,
                         g1_ref, b1_ref,
                         watt_ref, batt_ref, wo_ref, bo_ref,
                         o_ref, *, batch):
    """Fused: (folded) cat_proj + num_proj(+LN) + pos + LN1 + 1-head last-query
    attention + out_proj + residual.  Rows are time-major: r = s*B + b."""
    f32 = jnp.float32
    R, H = o_ref.shape

    # Categorical projection (lgcn linears already folded in; output pre-padded
    # to H lanes so the numeric half can be added with a placement matmul).
    x = jnp.dot(cat_ref[...], wcat_ref[...], preferred_element_type=f32) + bcat_ref[...]

    # Numeric projection + LayerNorm, placed into the upper H//2 lanes.
    n = jnp.dot(num_ref[...], wnum_ref[...], preferred_element_type=f32) + bnum_ref[...]
    n = _layernorm_val(n, gnum_ref[...], btnum_ref[...])
    x = x + jnp.dot(n, nplace_ref[...], preferred_element_type=f32)

    # + positional embedding, layer_norm1
    x = x + pos_ref[...]
    xn = _layernorm_val(x, g1_ref[...], b1_ref[...])          # (R, H) == skip_X

    # Single-head attention with the last time step as the only query.
    q = jnp.dot(xn[R - batch:, :], watt_ref[0], preferred_element_type=f32) + batt_ref[0]
    k = jnp.dot(xn, watt_ref[1], preferred_element_type=f32) + batt_ref[1]
    v = jnp.dot(xn, watt_ref[2], preferred_element_type=f32) + batt_ref[2]

    scale = 1.0 / (float(H) ** 0.5)
    s = jax.lax.dot_general(q, k, (((1,), (1,)), ((), ())),
                            preferred_element_type=f32) * scale   # (B, R)
    # Only keys belonging to the same batch element are valid.
    s = jnp.where(mask_ref[...] > 0.5, s, jnp.float32(-1e30))
    s = s - jnp.max(s, axis=-1, keepdims=True)
    p = jnp.exp(s)
    p = p * pl.reciprocal(jnp.sum(p, axis=-1, keepdims=True), approx=True)
    att = jnp.dot(p, v, preferred_element_type=f32)               # (B, H)
    att = jnp.dot(att, wo_ref[...], preferred_element_type=f32) + bo_ref[...]

    # Broadcast the attention output over all time steps (selection matmul)
    # and add the residual.
    o_ref[...] = xn + jnp.dot(sel_ref[...], att, preferred_element_type=f32)


def _lstm_head_kernel(x_ref, wih_ref, whh_ref, bg_ref,
                      g2_ref, b2_ref,
                      w1_ref, bb1_ref, w2_ref, bb2_ref,
                      ow_ref, ob_ref,
                      o_ref, *, seq_len):
    """Fused: single-layer LSTM over (S, B, H) (in-kernel time loop, last hidden
    only) + LayerNorm2 + Feed_Forward_block (+ skip) + output head."""
    f32 = jnp.float32
    B = x_ref.shape[1]
    H = x_ref.shape[2]

    # Per-gate, lane-aligned weight slabs (PyTorch gate order i, f, g, o).
    wi_i, wi_f, wi_g, wi_o = wih_ref[0], wih_ref[1], wih_ref[2], wih_ref[3]
    wh_i, wh_f, wh_g, wh_o = whh_ref[0], whh_ref[1], whh_ref[2], whh_ref[3]
    b_i, b_f, b_g, b_o = bg_ref[0], bg_ref[1], bg_ref[2], bg_ref[3]

    def step(t, carry):
        h, c = carry
        x_t = x_ref[t]                                             # (B, H)
        ig = jax.nn.sigmoid(jnp.dot(x_t, wi_i, preferred_element_type=f32)
                            + jnp.dot(h, wh_i, preferred_element_type=f32) + b_i)
        fg = jax.nn.sigmoid(jnp.dot(x_t, wi_f, preferred_element_type=f32)
                            + jnp.dot(h, wh_f, preferred_element_type=f32) + b_f)
        gg = jnp.tanh(jnp.dot(x_t, wi_g, preferred_element_type=f32)
                      + jnp.dot(h, wh_g, preferred_element_type=f32) + b_g)
        og = jax.nn.sigmoid(jnp.dot(x_t, wi_o, preferred_element_type=f32)
                            + jnp.dot(h, wh_o, preferred_element_type=f32) + b_o)
        c_new = fg * c + ig * gg
        h_new = og * jnp.tanh(c_new)
        return h_new, c_new

    h0 = jnp.zeros((B, H), f32)
    c0 = jnp.zeros((B, H), f32)
    h, _ = jax.lax.fori_loop(0, seq_len, step, (h0, c0), unroll=True)

    # layer_norm2 -> FFN (+ skip) -> output head
    xl = _layernorm_val(h, g2_ref[...], b2_ref[...])
    ff = jnp.dot(xl, w1_ref[...], preferred_element_type=f32) + bb1_ref[...]
    ff = jnp.maximum(ff, 0.0)
    y = jnp.dot(ff, w2_ref[...], preferred_element_type=f32) + bb2_ref[...] + xl
    o_ref[...] = jnp.dot(y, ow_ref[...], preferred_element_type=f32) + ob_ref[...]


# ----------------------------------------------------------------------------
# pallas_call wrappers
# ----------------------------------------------------------------------------

def _full_spec(x):
    nd = x.ndim
    return pl.BlockSpec(x.shape, lambda i, nd=nd: (0,) * nd)


def encoder_attention(cat_all, num_feats, pos_rows, attn_mask, bcast_sel, fw, B):
    # TODO(synk): for production batch/seq add a grid over the batch axis (the
    # attention/LSTM are independent per batch element) to respect v7x's 64 MiB
    # VMEM; at toy sizes full-array blocks are optimal.
    R, H = pos_rows.shape
    args = (cat_all, num_feats, pos_rows, attn_mask, bcast_sel,
            fw["w_cat"], fw["b_cat"],
            fw["w_num"], fw["b_num"], fw["g_num"], fw["bt_num"], fw["n_place"],
            fw["g1"], fw["b1"],
            fw["w_att"], fw["b_att"], fw["w_o"], fw["b_o"])
    return pl.pallas_call(
        functools.partial(_encoder_attn_kernel, batch=B),
        out_shape=jax.ShapeDtypeStruct((R, H), jnp.float32),
        grid=(1,),
        in_specs=[_full_spec(a) for a in args],
        out_specs=pl.BlockSpec((R, H), lambda i: (0, 0)),
        compiler_params=pltpu.CompilerParams(dimension_semantics=("arbitrary",)),
    )(*args)


def lstm_head(x_sbh, fw):
    S, B, H = x_sbh.shape
    args = (x_sbh, fw["w_ih"], fw["w_hh"], fw["b_g"],
            fw["g2"], fw["b2"],
            fw["w1"], fw["bb1"], fw["w2"], fw["bb2"],
            fw["ow"], fw["ob"])
    return pl.pallas_call(
        functools.partial(_lstm_head_kernel, seq_len=S),
        out_shape=jax.ShapeDtypeStruct((B, 1), jnp.float32),
        grid=(1,),
        in_specs=[_full_spec(a) for a in args],
        out_specs=pl.BlockSpec((B, 1), lambda i: (0, 0)),
        compiler_params=pltpu.CompilerParams(dimension_semantics=("arbitrary",)),
    )(*args)


# ----------------------------------------------------------------------------
# Parameter construction (deterministic, synthetic) and offline weight folding
# ----------------------------------------------------------------------------

def sinusoidal_pos(seq_len, hidden):
    # TODO(synk): get_pos() is not defined in the source file; a deterministic
    # sinusoidal table of shape (1, S, H) is used as the positional embedding.
    pos = jnp.arange(seq_len, dtype=jnp.float32)[:, None]
    i = jnp.arange(hidden, dtype=jnp.float32)[None, :]
    angle = pos / jnp.power(10000.0, (2.0 * jnp.floor(i / 2.0)) / hidden)
    pe = jnp.where((jnp.arange(hidden) % 2) == 0, jnp.sin(angle), jnp.cos(angle))
    return pe[None].astype(jnp.float32)


def init_params(key, cfg):
    H = cfg["hidden_dim"]
    Hd3 = H // 3
    Hd2 = H // 2
    S = cfg["max_seq_len"]

    keys = iter(jax.random.split(key, 64))

    def nrm(shape, scale=0.05):
        return scale * jax.random.normal(next(keys), shape, dtype=jnp.float32)

    p = {}
    # embedding tables (nn.Embedding(vocab, H//3))
    p["emb_interaction"] = nrm((3, Hd3))
    p["emb_test"] = nrm((cfg["n_test"] + 1, Hd3))
    p["emb_question"] = nrm((cfg["n_questions"] + 1, Hd3))
    p["emb_tag"] = nrm((cfg["n_tag"] + 1, Hd3))
    p["emb_big"] = nrm((cfg["n_big"] + 1, Hd3))
    p["emb_mid"] = nrm((cfg["n_mid"] + 1, Hd3))
    p["emb_problem"] = nrm((cfg["n_problem"] + 1, Hd3))
    p["emb_month"] = nrm((cfg["n_month"] + 1, Hd3))
    p["emb_dayname"] = nrm((cfg["n_dayname"] + 1, Hd3))
    p["emb_user_tag_cluster"] = nrm((cfg["n_user_tag_cluster"] + 1, Hd3))

    # synthetic LightGCN item embedding matrices (get_embed in the reference)
    p["lgcn_test_matrix"] = nrm((cfg["test_n_user"] - 1 + cfg["n_test"] + 1, 256))
    p["lgcn_question_matrix"] = nrm((cfg["question_n_user"] - 1 + cfg["n_questions"] + 1, 128))
    p["lgcn_linear_test_w"] = nrm((256, Hd3))
    p["lgcn_linear_test_b"] = nrm((Hd3,))
    p["lgcn_linear_w"] = nrm((128, Hd3))
    p["lgcn_linear_b"] = nrm((Hd3,))

    # cat / num projections
    p["cat_proj_w"] = nrm((Hd3 * 9, Hd2))
    p["cat_proj_b"] = nrm((Hd2,))
    p["num_proj_w"] = nrm((7, Hd2))
    p["num_proj_b"] = nrm((Hd2,))
    p["num_ln_g"] = jnp.ones((Hd2,), jnp.float32)
    p["num_ln_b"] = jnp.zeros((Hd2,), jnp.float32)

    # positional embedding
    p["pos"] = sinusoidal_pos(S, H)

    # multi-head attention (1 head): q/k/v + out_proj
    p["wq"], p["bq"] = nrm((H, H)), nrm((H,))
    p["wk"], p["bk"] = nrm((H, H)), nrm((H,))
    p["wv"], p["bv"] = nrm((H, H)), nrm((H,))
    p["wo"], p["bo"] = nrm((H, H)), nrm((H,))

    # layer norms
    p["ln1_g"] = jnp.ones((H,), jnp.float32)
    p["ln1_b"] = jnp.zeros((H,), jnp.float32)
    p["ln2_g"] = jnp.ones((H,), jnp.float32)
    p["ln2_b"] = jnp.zeros((H,), jnp.float32)

    # LSTM (weights pre-transposed; bias = b_ih + b_hh; gate order i, f, g, o)
    p["lstm_wih_t"] = nrm((H, 4 * H))
    p["lstm_whh_t"] = nrm((H, 4 * H))
    p["lstm_b"] = nrm((4 * H,))

    # feed forward block and output head
    p["ffn_w1"], p["ffn_b1"] = nrm((H, 4 * H)), nrm((4 * H,))
    p["ffn_w2"], p["ffn_b2"] = nrm((4 * H, H)), nrm((H,))
    p["out_w"], p["out_b"] = nrm((H, 1)), nrm((1,))
    return p


def fold_params(params, cfg):
    """Offline weight folding / reshaping for the two fused kernels."""
    H = cfg["hidden_dim"]
    Hd3, Hd2 = H // 3, H // 2

    # ---- fold lgcn_linear{,_test} into cat_proj (linear->concat->linear) ----
    Wc, bc = params["cat_proj_w"], params["cat_proj_b"]          # (9*Hd3, Hd2)
    ch = [Wc[i * Hd3:(i + 1) * Hd3] for i in range(9)]
    # cat order: inter, test, test_lgcn, question, question_lgcn, tag, big, month, dayname
    w_fold = jnp.concatenate(
        [ch[0], ch[1], params["lgcn_linear_test_w"] @ ch[2], ch[3],
         params["lgcn_linear_w"] @ ch[4], ch[5], ch[6], ch[7], ch[8]], axis=0)
    b_fold = (bc + params["lgcn_linear_test_b"] @ ch[2]
              + params["lgcn_linear_b"] @ ch[4])

    pad = H - Hd2
    fw = {}
    # zero-pad cat projection to H output lanes; numeric half is added via a
    # placement matmul (avoids an in-kernel lane-offset concat).
    fw["w_cat"] = jnp.concatenate(
        [w_fold, jnp.zeros((w_fold.shape[0], pad), jnp.float32)], axis=1)
    fw["b_cat"] = jnp.concatenate([b_fold, jnp.zeros((pad,), jnp.float32)]).reshape(1, H)
    fw["w_num"] = params["num_proj_w"]
    fw["b_num"] = params["num_proj_b"].reshape(1, Hd2)
    fw["g_num"] = params["num_ln_g"].reshape(1, Hd2)
    fw["bt_num"] = params["num_ln_b"].reshape(1, Hd2)
    fw["n_place"] = jnp.concatenate(
        [jnp.zeros((Hd2, Hd2), jnp.float32), jnp.eye(Hd2, dtype=jnp.float32)], axis=1)

    fw["g1"] = params["ln1_g"].reshape(1, H)
    fw["b1"] = params["ln1_b"].reshape(1, H)

    # stacked q/k/v weights (one DMA, per-matrix dots inside the kernel)
    fw["w_att"] = jnp.stack([params["wq"], params["wk"], params["wv"]])        # (3,H,H)
    fw["b_att"] = jnp.stack([params["bq"], params["bk"], params["bv"]]).reshape(3, 1, H)
    fw["w_o"] = params["wo"]
    fw["b_o"] = params["bo"].reshape(1, H)

    # LSTM gate weights split per-gate -> lane-aligned (4, H, H) slabs
    fw["w_ih"] = jnp.transpose(params["lstm_wih_t"].reshape(H, 4, H), (1, 0, 2))
    fw["w_hh"] = jnp.transpose(params["lstm_whh_t"].reshape(H, 4, H), (1, 0, 2))
    fw["b_g"] = params["lstm_b"].reshape(4, 1, H)

    fw["g2"] = params["ln2_g"].reshape(1, H)
    fw["b2"] = params["ln2_b"].reshape(1, H)
    fw["w1"] = params["ffn_w1"]
    fw["bb1"] = params["ffn_b1"].reshape(1, 4 * H)
    fw["w2"] = params["ffn_w2"]
    fw["bb2"] = params["ffn_b2"].reshape(1, H)
    fw["ow"] = params["out_w"]
    fw["ob"] = params["out_b"].reshape(1, 1)
    return fw


# ----------------------------------------------------------------------------
# Forward pass (gathers + tiny index prep in XLA, everything else in 2 kernels)
# ----------------------------------------------------------------------------

def forward(params, inputs, cfg):
    (test, question, tag, _unused, mask, interaction, big, mid, problem, month,
     dayname, user_tag_cluster, solvesec_600, test_mean, test_std, test_sum,
     tag_mean, tag_std, tag_sum, big_mean, big_std, big_sum,
     user_correct_answer, user_total_answer, user_acc) = inputs
    del mask, mid, problem, user_tag_cluster  # unused downstream in reference

    B, S = interaction.shape
    H = cfg["hidden_dim"]
    R = S * B

    # time-major gathers: index arrays are transposed first (tiny), so every
    # gathered slab is already (S, B, feat) with no big-tensor transposes.
    gat = lambda tbl, idx: jnp.take(tbl, idx.T, axis=0)

    e_inter = gat(params["emb_interaction"], interaction)
    e_test = gat(params["emb_test"], test)
    t_raw = jnp.take(params["lgcn_test_matrix"],
                     test.T + (cfg["test_n_user"] - 1), axis=0)        # (S,B,256)
    e_q = gat(params["emb_question"], question)
    q_raw = jnp.take(params["lgcn_question_matrix"],
                     question.T + (cfg["question_n_user"] - 1), axis=0)  # (S,B,128)
    e_tag = gat(params["emb_tag"], tag)
    e_big = gat(params["emb_big"], big)
    e_month = gat(params["emb_month"], month)
    e_dyn = gat(params["emb_dayname"], dayname)

    # raw lgcn features replace the (already-folded) lgcn-projected chunks
    cat_all = jnp.concatenate(
        [e_inter, e_test, t_raw, e_q, q_raw, e_tag, e_big, e_month, e_dyn],
        axis=2).reshape(R, -1).astype(jnp.float32)

    num_feats = jnp.stack(
        [solvesec_600.T, test_mean.T, test_std.T, tag_mean.T, tag_std.T,
         big_mean.T, big_std.T], axis=2).astype(jnp.float32).reshape(R, 7)

    pos_rows = jnp.repeat(params["pos"][0], B, axis=0)                  # (R, H)

    # per-batch key-validity mask (B, R) and broadcast-selection matrix (R, B)
    rid = jnp.arange(R, dtype=jnp.int32) % B
    attn_mask = (rid[None, :] == jnp.arange(B, dtype=jnp.int32)[:, None]).astype(jnp.float32)
    bcast_sel = attn_mask.T

    fw = fold_params(params, cfg)

    x2 = encoder_attention(cat_all, num_feats, pos_rows, attn_mask, bcast_sel, fw, B)
    out = lstm_head(x2.reshape(S, B, H), fw)                            # (B, 1)
    return out  # matches torch X.squeeze(-1): shape (B, 1)


# ----------------------------------------------------------------------------
# Example run
# ----------------------------------------------------------------------------

if __name__ == "__main__":
    cfg = dict(
        hidden_dim=48, max_seq_len=8,
        n_test=10, n_questions=20, n_tag=6, n_big=4, n_mid=5, n_problem=7,
        n_month=12, n_dayname=7, n_user_tag_cluster=3,
        test_n_user=3, question_n_user=4,
    )
    B, S = 2, cfg["max_seq_len"]

    key = jax.random.PRNGKey(0)
    k_param, k_in = jax.random.split(key)
    params = init_params(k_param, cfg)

    iks = iter(jax.random.split(k_in, 32))

    def cat_in(vocab):
        return jax.random.randint(next(iks), (B, S), 0, vocab, dtype=jnp.int32)

    def num_in():
        return jax.random.uniform(next(iks), (B, S), dtype=jnp.float32)

    inputs = (
        cat_in(cfg["n_test"] + 1),             # test
        cat_in(cfg["n_questions"] + 1),        # question
        cat_in(cfg["n_tag"] + 1),              # tag
        num_in(),                              # _ (unused)
        jnp.ones((B, S), jnp.int32),           # mask (unused in forward)
        cat_in(3),                             # interaction
        cat_in(cfg["n_big"] + 1),              # big
        cat_in(cfg["n_mid"] + 1),              # mid
        cat_in(cfg["n_problem"] + 1),          # problem
        cat_in(cfg["n_month"] + 1),            # month
        cat_in(cfg["n_dayname"] + 1),          # dayname
        cat_in(cfg["n_user_tag_cluster"] + 1), # user_tag_cluster
        num_in(),                              # solvesec_600
        num_in(),                              # test_mean
        num_in(),                              # test_std
        num_in(),                              # test_sum (unused)
        num_in(),                              # tag_mean
        num_in(),                              # tag_std
        num_in(),                              # tag_sum (unused)
        num_in(),                              # big_mean
        num_in(),                              # big_std
        num_in(),                              # big_sum (unused)
        num_in(),                              # user_correct_answer (unused)
        num_in(),                              # user_total_answer (unused)
        num_in(),                              # user_acc (unused)
    )

    out = forward(params, inputs, cfg)
    out = jax.block_until_ready(out)
    assert out.shape == (B, 1), out.shape
    assert jnp.all(jnp.isfinite(out))
    print("KERNEL_OK")
</pallas_src>

<mosaic_0001>
module attributes {stable_mosaic.version = 11 : i64} {
  func.func @_encoder_attn_kernel(%arg0: i32, %arg1: memref<16x496xf32, #tpu.memory_space<vmem>>, %arg2: memref<16x7xf32, #tpu.memory_space<vmem>>, %arg3: memref<16x48xf32, #tpu.memory_space<vmem>>, %arg4: memref<2x16xf32, #tpu.memory_space<vmem>>, %arg5: memref<16x2xf32, #tpu.memory_space<vmem>>, %arg6: memref<496x48xf32, #tpu.memory_space<vmem>>, %arg7: memref<1x48xf32, #tpu.memory_space<vmem>>, %arg8: memref<7x24xf32, #tpu.memory_space<vmem>>, %arg9: memref<1x24xf32, #tpu.memory_space<vmem>>, %arg10: memref<1x24xf32, #tpu.memory_space<vmem>>, %arg11: memref<1x24xf32, #tpu.memory_space<vmem>>, %arg12: memref<24x48xf32, #tpu.memory_space<vmem>>, %arg13: memref<1x48xf32, #tpu.memory_space<vmem>>, %arg14: memref<1x48xf32, #tpu.memory_space<vmem>>, %arg15: memref<3x48x48xf32, #tpu.memory_space<vmem>>, %arg16: memref<3x1x48xf32, #tpu.memory_space<vmem>>, %arg17: memref<48x48xf32, #tpu.memory_space<vmem>>, %arg18: memref<1x48xf32, #tpu.memory_space<vmem>>, %arg19: memref<16x48xf32, #tpu.memory_space<vmem>>) attributes {dimension_semantics = [#tpu.dimension_semantics<arbitrary>], iteration_bounds = array<i64: 1>, scalar_prefetch = 0 : i64, scratch_operands = 0 : i64, tpu.core_type = #tpu.core_type<tc>, window_params = [{pipeline_mode = #tpu.pipeline_mode<synchronous>, transform_indices = @transform_0, window_bounds = array<i64: 16, 496>}, {pipeline_mode = #tpu.pipeline_mode<synchronous>, transform_indices = @transform_1, window_bounds = array<i64: 16, 7>}, {pipeline_mode = #tpu.pipeline_mode<synchronous>, transform_indices = @transform_2, window_bounds = array<i64: 16, 48>}, {pipeline_mode = #tpu.pipeline_mode<synchronous>, transform_indices = @transform_3, window_bounds = array<i64: 2, 16>}, {pipeline_mode = #tpu.pipeline_mode<synchronous>, transform_indices = @transform_4, window_bounds = array<i64: 16, 2>}, {pipeline_mode = #tpu.pipeline_mode<synchronous>, transform_indices = @transform_5, window_bounds = array<i64: 496, 48>}, {pipeline_mode = #tpu.pipeline_mode<synchronous>, transform_indices = @transform_6, window_bounds = array<i64: 1, 48>}, {pipeline_mode = #tpu.pipeline_mode<synchronous>, transform_indices = @transform_7, window_bounds = array<i64: 7, 24>}, {pipeline_mode = #tpu.pipeline_mode<synchronous>, transform_indices = @transform_8, window_bounds = array<i64: 1, 24>}, {pipeline_mode = #tpu.pipeline_mode<synchronous>, transform_indices = @transform_9, window_bounds = array<i64: 1, 24>}, {pipeline_mode = #tpu.pipeline_mode<synchronous>, transform_indices = @transform_10, window_bounds = array<i64: 1, 24>}, {pipeline_mode = #tpu.pipeline_mode<synchronous>, transform_indices = @transform_11, window_bounds = array<i64: 24, 48>}, {pipeline_mode = #tpu.pipeline_mode<synchronous>, transform_indices = @transform_12, window_bounds = array<i64: 1, 48>}, {pipeline_mode = #tpu.pipeline_mode<synchronous>, transform_indices = @transform_13, window_bounds = array<i64: 1, 48>}, {pipeline_mode = #tpu.pipeline_mode<synchronous>, transform_indices = @transform_14, window_bounds = array<i64: 3, 48, 48>}, {pipeline_mode = #tpu.pipeline_mode<synchronous>, transform_indices = @transform_15, window_bounds = array<i64: 3, 1, 48>}, {pipeline_mode = #tpu.pipeline_mode<synchronous>, transform_indices = @transform_16, window_bounds = array<i64: 48, 48>}, {pipeline_mode = #tpu.pipeline_mode<synchronous>, transform_indices = @transform_17, window_bounds = array<i64: 1, 48>}, {pipeline_mode = #tpu.pipeline_mode<synchronous>, transform_indices = @transform_18, window_bounds = array<i64: 16, 48>}]} {
    %c0 = arith.constant 0 : index
    %c0_0 = arith.constant 0 : index
    %0 = vector.load %arg1[%c0, %c0_0] : memref<16x496xf32, #tpu.memory_space<vmem>>, vector<16x496xf32>
    %c0_1 = arith.constant 0 : index
    %c0_2 = arith.constant 0 : index
    %1 = vector.load %arg6[%c0_1, %c0_2] : memref<496x48xf32, #tpu.memory_space<vmem>>, vector<496x48xf32>
    %cst = arith.constant dense<0.000000e+00> : vector<16x48xf32>
    %2 = tpu.matmul %0, %1, %cst {dimension_numbers = #tpu.dot_dimension_numbers<[1], [0], [0], [1], [0, 0, 1, 1], [], []>} : vector<16x496xf32>, vector<496x48xf32>, vector<16x48xf32> -> vector<16x48xf32>
    %c0_3 = arith.constant 0 : index
    %c0_4 = arith.constant 0 : index
    %3 = vector.load %arg7[%c0_3, %c0_4] : memref<1x48xf32, #tpu.memory_space<vmem>>, vector<1x48xf32>
    %4 = vector.broadcast %3 : vector<1x48xf32> to vector<16x48xf32>
    %5 = arith.addf %2, %4 : vector<16x48xf32>
    %c0_5 = arith.constant 0 : index
    %c0_6 = arith.constant 0 : index
    %6 = vector.load %arg2[%c0_5, %c0_6] : memref<16x7xf32, #tpu.memory_space<vmem>>, vector<16x7xf32>
    %c0_7 = arith.constant 0 : index
    %c0_8 = arith.constant 0 : index
    %7 = vector.load %arg8[%c0_7, %c0_8] : memref<7x24xf32, #tpu.memory_space<vmem>>, vector<7x24xf32>
    %cst_9 = arith.constant dense<0.000000e+00> : vector<16x24xf32>
    %8 = tpu.matmul %6, %7, %cst_9 {dimension_numbers = #tpu.dot_dimension_numbers<[1], [0], [0], [1], [0, 0, 1, 1], [], []>} : vector<16x7xf32>, vector<7x24xf32>, vector<16x24xf32> -> vector<16x24xf32>
    %c0_10 = arith.constant 0 : index
    %c0_11 = arith.constant 0 : index
    %9 = vector.load %arg9[%c0_10, %c0_11] : memref<1x24xf32, #tpu.memory_space<vmem>>, vector<1x24xf32>
    %10 = vector.broadcast %9 : vector<1x24xf32> to vector<16x24xf32>
    %11 = arith.addf %8, %10 : vector<16x24xf32>
    %c0_12 = arith.constant 0 : index
    %c0_13 = arith.constant 0 : index
    %12 = vector.load %arg10[%c0_12, %c0_13] : memref<1x24xf32, #tpu.memory_space<vmem>>, vector<1x24xf32>
    %c0_14 = arith.constant 0 : index
    %c0_15 = arith.constant 0 : index
    %13 = vector.load %arg11[%c0_14, %c0_15] : memref<1x24xf32, #tpu.memory_space<vmem>>, vector<1x24xf32>
    %cst_16 = arith.constant dense<0.000000e+00> : vector<16xf32>
    %14 = vector.multi_reduction <add>, %11, %cst_16 [1] : vector<16x24xf32> to vector<16xf32>
    %15 = vector.shape_cast %14 : vector<16xf32> to vector<16x1xf32>
    %cst_17 = arith.constant 2.400000e+01 : f32
    %16 = vector.broadcast %cst_17 : f32 to vector<16x1xf32>
    %17 = arith.divf %15, %16 : vector<16x1xf32>
    %18 = vector.broadcast %17 : vector<16x1xf32> to vector<16x24xf32>
    %19 = arith.subf %11, %18 : vector<16x24xf32>
    %20 = arith.mulf %19, %19 : vector<16x24xf32>
    %cst_18 = arith.constant dense<0.000000e+00> : vector<16xf32>
    %21 = vector.multi_reduction <add>, %20, %cst_18 [1] : vector<16x24xf32> to vector<16xf32>
    %22 = vector.shape_cast %21 : vector<16xf32> to vector<16x1xf32>
    %cst_19 = arith.constant 2.400000e+01 : f32
    %23 = vector.broadcast %cst_19 : f32 to vector<16x1xf32>
    %24 = arith.divf %22, %23 : vector<16x1xf32>
    %25 = vector.broadcast %17 : vector<16x1xf32> to vector<16x24xf32>
    %26 = arith.subf %11, %25 : vector<16x24xf32>
    %cst_20 = arith.constant 9.99999974E-6 : f32
    %27 = vector.broadcast %cst_20 : f32 to vector<16x1xf32>
    %28 = arith.addf %24, %27 : vector<16x1xf32>
    %29 = math.rsqrt %28 : vector<16x1xf32>
    %30 = vector.broadcast %29 : vector<16x1xf32> to vector<16x24xf32>
    %31 = arith.mulf %26, %30 : vector<16x24xf32>
    %32 = vector.broadcast %12 : vector<1x24xf32> to vector<16x24xf32>
    %33 = arith.mulf %31, %32 : vector<16x24xf32>
    %34 = vector.broadcast %13 : vector<1x24xf32> to vector<16x24xf32>
    %35 = arith.addf %33, %34 : vector<16x24xf32>
    %c0_21 = arith.constant 0 : index
    %c0_22 = arith.constant 0 : index
    %36 = vector.load %arg12[%c0_21, %c0_22] : memref<24x48xf32, #tpu.memory_space<vmem>>, vector<24x48xf32>
    %cst_23 = arith.constant dense<0.000000e+00> : vector<16x48xf32>
    %37 = tpu.matmul %35, %36, %cst_23 {dimension_numbers = #tpu.dot_dimension_numbers<[1], [0], [0], [1], [0, 0, 1, 1], [], []>} : vector<16x24xf32>, vector<24x48xf32>, vector<16x48xf32> -> vector<16x48xf32>
    %38 = arith.addf %5, %37 : vector<16x48xf32>
    %c0_24 = arith.constant 0 : index
    %c0_25 = arith.constant 0 : index
    %39 = vector.load %arg3[%c0_24, %c0_25] : memref<16x48xf32, #tpu.memory_space<vmem>>, vector<16x48xf32>
    %40 = arith.addf %38, %39 : vector<16x48xf32>
    %c0_26 = arith.constant 0 : index
    %c0_27 = arith.constant 0 : index
    %41 = vector.load %arg13[%c0_26, %c0_27] : memref<1x48xf32, #tpu.memory_space<vmem>>, vector<1x48xf32>
    %c0_28 = arith.constant 0 : index
    %c0_29 = arith.constant 0 : index
    %42 = vector.load %arg14[%c0_28, %c0_29] : memref<1x48xf32, #tpu.memory_space<vmem>>, vector<1x48xf32>
    %cst_30 = arith.constant dense<0.000000e+00> : vector<16xf32>
    %43 = vector.multi_reduction <add>, %40, %cst_30 [1] : vector<16x48xf32> to vector<16xf32>
    %44 = vector.shape_cast %43 : vector<16xf32> to vector<16x1xf32>
    %cst_31 = arith.constant 4.800000e+01 : f32
    %45 = vector.broadcast %cst_31 : f32 to vector<16x1xf32>
    %46 = arith.divf %44, %45 : vector<16x1xf32>
    %47 = vector.broadcast %46 : vector<16x1xf32> to vector<16x48xf32>
    %48 = arith.subf %40, %47 : vector<16x48xf32>
    %49 = arith.mulf %48, %48 : vector<16x48xf32>
    %cst_32 = arith.constant dense<0.000000e+00> : vector<16xf32>
    %50 = vector.multi_reduction <add>, %49, %cst_32 [1] : vector<16x48xf32> to vector<16xf32>
    %51 = vector.shape_cast %50 : vector<16xf32> to vector<16x1xf32>
    %cst_33 = arith.constant 4.800000e+01 : f32
    %52 = vector.broadcast %cst_33 : f32 to vector<16x1xf32>
    %53 = arith.divf %51, %52 : vector<16x1xf32>
    %54 = vector.broadcast %46 : vector<16x1xf32> to vector<16x48xf32>
    %55 = arith.subf %40, %54 : vector<16x48xf32>
    %cst_34 = arith.constant 9.99999974E-6 : f32
    %56 = vector.broadcast %cst_34 : f32 to vector<16x1xf32>
    %57 = arith.addf %53, %56 : vector<16x1xf32>
    %58 = math.rsqrt %57 : vector<16x1xf32>
    %59 = vector.broadcast %58 : vector<16x1xf32> to vector<16x48xf32>
    %60 = arith.mulf %55, %59 : vector<16x48xf32>
    %61 = vector.broadcast %41 : vector<1x48xf32> to vector<16x48xf32>
    %62 = arith.mulf %60, %61 : vector<16x48xf32>
    %63 = vector.broadcast %42 : vector<1x48xf32> to vector<16x48xf32>
    %64 = arith.addf %62, %63 : vector<16x48xf32>
    %65 = vector.extract_strided_slice %64 {offsets = [14, 0], sizes = [2, 48], strides = [1, 1]} : vector<16x48xf32> to vector<2x48xf32>
    %c0_35 = arith.constant 0 : index
    %c0_36 = arith.constant 0 : index
    %c0_37 = arith.constant 0 : index
    %66 = vector.load %arg15[%c0_35, %c0_36, %c0_37] : memref<3x48x48xf32, #tpu.memory_space<vmem>>, vector<1x48x48xf32>
    %67 = vector.shape_cast %66 : vector<1x48x48xf32> to vector<48x48xf32>
    %cst_38 = arith.constant dense<0.000000e+00> : vector<2x48xf32>
    %68 = tpu.matmul %65, %67, %cst_38 {dimension_numbers = #tpu.dot_dimension_numbers<[1], [0], [0], [1], [0, 0, 1, 1], [], []>} : vector<2x48xf32>, vector<48x48xf32>, vector<2x48xf32> -> vector<2x48xf32>
    %c0_39 = arith.constant 0 : index
    %c0_40 = arith.constant 0 : index
    %c0_41 = arith.constant 0 : index
    %69 = vector.load %arg16[%c0_39, %c0_40, %c0_41] : memref<3x1x48xf32, #tpu.memory_space<vmem>>, vector<1x1x48xf32>
    %70 = vector.shape_cast %69 : vector<1x1x48xf32> to vector<1x48xf32>
    %71 = vector.broadcast %70 : vector<1x48xf32> to vector<2x48xf32>
    %72 = arith.addf %68, %71 : vector<2x48xf32>
    %c1 = arith.constant 1 : index
    %c0_42 = arith.constant 0 : index
    %c0_43 = arith.constant 0 : index
    %73 = vector.load %arg15[%c1, %c0_42, %c0_43] : memref<3x48x48xf32, #tpu.memory_space<vmem>>, vector<1x48x48xf32>
    %74 = vector.shape_cast %73 : vector<1x48x48xf32> to vector<48x48xf32>
    %cst_44 = arith.constant dense<0.000000e+00> : vector<16x48xf32>
    %75 = tpu.matmul %64, %74, %cst_44 {dimension_numbers = #tpu.dot_dimension_numbers<[1], [0], [0], [1], [0, 0, 1, 1], [], []>} : vector<16x48xf32>, vector<48x48xf32>, vector<16x48xf32> -> vector<16x48xf32>
    %c1_45 = arith.constant 1 : index
    %c0_46 = arith.constant 0 : index
    %c0_47 = arith.constant 0 : index
    %76 = vector.load %arg16[%c1_45, %c0_46, %c0_47] : memref<3x1x48xf32, #tpu.memory_space<vmem>>, vector<1x1x48xf32>
    %77 = vector.shape_cast %76 : vector<1x1x48xf32> to vector<1x48xf32>
    %78 = vector.broadcast %77 : vector<1x48xf32> to vector<16x48xf32>
    %79 = arith.addf %75, %78 : vector<16x48xf32>
    %c2 = arith.constant 2 : index
    %c0_48 = arith.constant 0 : index
    %c0_49 = arith.constant 0 : index
    %80 = vector.load %arg15[%c2, %c0_48, %c0_49] : memref<3x48x48xf32, #tpu.memory_space<vmem>>, vector<1x48x48xf32>
    %81 = vector.shape_cast %80 : vector<1x48x48xf32> to vector<48x48xf32>
    %cst_50 = arith.constant dense<0.000000e+00> : vector<16x48xf32>
    %82 = tpu.matmul %64, %81, %cst_50 {dimension_numbers = #tpu.dot_dimension_numbers<[1], [0], [0], [1], [0, 0, 1, 1], [], []>} : vector<16x48xf32>, vector<48x48xf32>, vector<16x48xf32> -> vector<16x48xf32>
    %c2_51 = arith.constant 2 : index
    %c0_52 = arith.constant 0 : index
    %c0_53 = arith.constant 0 : index
    %83 = vector.load %arg16[%c2_51, %c0_52, %c0_53] : memref<3x1x48xf32, #tpu.memory_space<vmem>>, vector<1x1x48xf32>
    %84 = vector.shape_cast %83 : vector<1x1x48xf32> to vector<1x48xf32>
    %85 = vector.broadcast %84 : vector<1x48xf32> to vector<16x48xf32>
    %86 = arith.addf %82, %85 : vector<16x48xf32>
    %cst_54 = arith.constant dense<0.000000e+00> : vector<2x16xf32>
    %87 = tpu.matmul %72, %79, %cst_54 {dimension_numbers = #tpu.dot_dimension_numbers<[1], [1], [0], [0], [0, 0, 1, 0], [], []>} : vector<2x48xf32>, vector<16x48xf32>, vector<2x16xf32> -> vector<2x16xf32>
    %cst_55 = arith.constant 0.144337565 : f32
    %88 = vector.broadcast %cst_55 : f32 to vector<2x16xf32>
    %89 = arith.mulf %87, %88 : vector<2x16xf32>
    %c0_56 = arith.constant 0 : index
    %c0_57 = arith.constant 0 : index
    %90 = vector.load %arg4[%c0_56, %c0_57] : memref<2x16xf32, #tpu.memory_space<vmem>>, vector<2x16xf32>
    %cst_58 = arith.constant 5.000000e-01 : f32
    %91 = vector.broadcast %cst_58 : f32 to vector<2x16xf32>
    %92 = arith.cmpf ogt, %90, %91 : vector<2x16xf32>
    %cst_59 = arith.constant -1.000000e+30 : f32
    %93 = vector.broadcast %cst_59 : f32 to vector<2x16xf32>
    %94 = arith.select %92, %89, %93 : vector<2x16xi1>, vector<2x16xf32>
    %cst_60 = arith.constant dense<0xFF800000> : vector<2xf32>
    %95 = vector.multi_reduction <maximumf>, %94, %cst_60 [1] : vector<2x16xf32> to vector<2xf32>
    %96 = vector.shape_cast %95 : vector<2xf32> to vector<2x1xf32>
    %97 = vector.broadcast %96 : vector<2x1xf32> to vector<2x16xf32>
    %98 = arith.subf %94, %97 : vector<2x16xf32>
    %99 = math.exp %98 : vector<2x16xf32>
    %cst_61 = arith.constant dense<0.000000e+00> : vector<2xf32>
    %100 = vector.multi_reduction <add>, %99, %cst_61 [1] : vector<2x16xf32> to vector<2xf32>
    %101 = vector.shape_cast %100 : vector<2xf32> to vector<2x1xf32>
    %102 = tpu.reciprocal %101 {approx = true} : vector<2x1xf32> -> vector<2x1xf32>
    %103 = vector.broadcast %102 : vector<2x1xf32> to vector<2x16xf32>
    %104 = arith.mulf %99, %103 : vector<2x16xf32>
    %cst_62 = arith.constant dense<0.000000e+00> : vector<2x48xf32>
    %105 = tpu.matmul %104, %86, %cst_62 {dimension_numbers = #tpu.dot_dimension_numbers<[1], [0], [0], [1], [0, 0, 1, 1], [], []>} : vector<2x16xf32>, vector<16x48xf32>, vector<2x48xf32> -> vector<2x48xf32>
    %c0_63 = arith.constant 0 : index
    %c0_64 = arith.constant 0 : index
    %106 = vector.load %arg17[%c0_63, %c0_64] : memref<48x48xf32, #tpu.memory_space<vmem>>, vector<48x48xf32>
    %cst_65 = arith.constant dense<0.000000e+00> : vector<2x48xf32>
    %107 = tpu.matmul %105, %106, %cst_65 {dimension_numbers = #tpu.dot_dimension_numbers<[1], [0], [0], [1], [0, 0, 1, 1], [], []>} : vector<2x48xf32>, vector<48x48xf32>, vector<2x48xf32> -> vector<2x48xf32>
    %c0_66 = arith.constant 0 : index
    %c0_67 = arith.constant 0 : index
    %108 = vector.load %arg18[%c0_66, %c0_67] : memref<1x48xf32, #tpu.memory_space<vmem>>, vector<1x48xf32>
    %109 = vector.broadcast %108 : vector<1x48xf32> to vector<2x48xf32>
    %110 = arith.addf %107, %109 : vector<2x48xf32>
    %c0_68 = arith.constant 0 : index
    %c0_69 = arith.constant 0 : index
    %111 = vector.load %arg5[%c0_68, %c0_69] : memref<16x2xf32, #tpu.memory_space<vmem>>, vector<16x2xf32>
    %cst_70 = arith.constant dense<0.000000e+00> : vector<16x48xf32>
    %112 = tpu.matmul %111, %110, %cst_70 {dimension_numbers = #tpu.dot_dimension_numbers<[1], [0], [0], [1], [0, 0, 1, 1], [], []>} : vector<16x2xf32>, vector<2x48xf32>, vector<16x48xf32> -> vector<16x48xf32>
    %113 = arith.addf %64, %112 : vector<16x48xf32>
    %c0_71 = arith.constant 0 : index
    %c0_72 = arith.constant 0 : index
    %114 = vector.load %arg19[%c0_71, %c0_72] : memref<16x48xf32, #tpu.memory_space<vmem>>, vector<16x48xf32>
    tpu.vector_store %arg19[%c0_71, %c0_72], %113 {strides = array<i32>} : memref<16x48xf32, #tpu.memory_space<vmem>>, vector<16x48xf32>,
    return
  }
  func.func @transform_0(%arg0: i32) -> (i32, i32) {
    %c0_i32 = arith.constant 0 : i32
    %c0_i32_0 = arith.constant 0 : i32
    %c0_i32_1 = arith.constant 0 : i32
    return %c0_i32, %c0_i32_0 : i32, i32
  }
  func.func @transform_1(%arg0: i32) -> (i32, i32) {
    %c0_i32 = arith.constant 0 : i32
    %c0_i32_0 = arith.constant 0 : i32
    %c0_i32_1 = arith.constant 0 : i32
    return %c0_i32, %c0_i32_0 : i32, i32
  }
  func.func @transform_2(%arg0: i32) -> (i32, i32) {
    %c0_i32 = arith.constant 0 : i32
    %c0_i32_0 = arith.constant 0 : i32
    %c0_i32_1 = arith.constant 0 : i32
    return %c0_i32, %c0_i32_0 : i32, i32
  }
  func.func @transform_3(%arg0: i32) -> (i32, i32) {
    %c0_i32 = arith.constant 0 : i32
    %c0_i32_0 = arith.constant 0 : i32
    %c0_i32_1 = arith.constant 0 : i32
    return %c0_i32, %c0_i32_0 : i32, i32
  }
  func.func @transform_4(%arg0: i32) -> (i32, i32) {
    %c0_i32 = arith.constant 0 : i32
    %c0_i32_0 = arith.constant 0 : i32
    %c0_i32_1 = arith.constant 0 : i32
    return %c0_i32, %c0_i32_0 : i32, i32
  }
  func.func @transform_5(%arg0: i32) -> (i32, i32) {
    %c0_i32 = arith.constant 0 : i32
    %c0_i32_0 = arith.constant 0 : i32
    %c0_i32_1 = arith.constant 0 : i32
    return %c0_i32, %c0_i32_0 : i32, i32
  }
  func.func @transform_6(%arg0: i32) -> (i32, i32) {
    %c0_i32 = arith.constant 0 : i32
    %c0_i32_0 = arith.constant 0 : i32
    %c0_i32_1 = arith.constant 0 : i32
    return %c0_i32, %c0_i32_0 : i32, i32
  }
  func.func @transform_7(%arg0: i32) -> (i32, i32) {
    %c0_i32 = arith.constant 0 : i32
    %c0_i32_0 = arith.constant 0 : i32
    %c0_i32_1 = arith.constant 0 : i32
    return %c0_i32, %c0_i32_0 : i32, i32
  }
  func.func @transform_8(%arg0: i32) -> (i32, i32) {
    %c0_i32 = arith.constant 0 : i32
    %c0_i32_0 = arith.constant 0 : i32
    %c0_i32_1 = arith.constant 0 : i32
    return %c0_i32, %c0_i32_0 : i32, i32
  }
  func.func @transform_9(%arg0: i32) -> (i32, i32) {
    %c0_i32 = arith.constant 0 : i32
    %c0_i32_0 = arith.constant 0 : i32
    %c0_i32_1 = arith.constant 0 : i32
    return %c0_i32, %c0_i32_0 : i32, i32
  }
  func.func @transform_10(%arg0: i32) -> (i32, i32) {
    %c0_i32 = arith.constant 0 : i32
    %c0_i32_0 = arith.constant 0 : i32
    %c0_i32_1 = arith.constant 0 : i32
    return %c0_i32, %c0_i32_0 : i32, i32
  }
  func.func @transform_11(%arg0: i32) -> (i32, i32) {
    %c0_i32 = arith.constant 0 : i32
    %c0_i32_0 = arith.constant 0 : i32
    %c0_i32_1 = arith.constant 0 : i32
    return %c0_i32, %c0_i32_0 : i32, i32
  }
  func.func @transform_12(%arg0: i32) -> (i32, i32) {
    %c0_i32 = arith.constant 0 : i32
    %c0_i32_0 = arith.constant 0 : i32
    %c0_i32_1 = arith.constant 0 : i32
    return %c0_i32, %c0_i32_0 : i32, i32
  }
  func.func @transform_13(%arg0: i32) -> (i32, i32) {
    %c0_i32 = arith.constant 0 : i32
    %c0_i32_0 = arith.constant 0 : i32
    %c0_i32_1 = arith.constant 0 : i32
    return %c0_i32, %c0_i32_0 : i32, i32
  }
  func.func @transform_14(%arg0: i32) -> (i32, i32, i32) {
    %c0_i32 = arith.constant 0 : i32
    %c0_i32_0 = arith.constant 0 : i32
    %c0_i32_1 = arith.constant 0 : i32
    %c0_i32_2 = arith.constant 0 : i32
    return %c0_i32, %c0_i32_0, %c0_i32_1 : i32, i32, i32
  }
  func.func @transform_15(%arg0: i32) -> (i32, i32, i32) {
    %c0_i32 = arith.constant 0 : i32
    %c0_i32_0 = arith.constant 0 : i32
    %c0_i32_1 = arith.constant 0 : i32
    %c0_i32_2 = arith.constant 0 : i32
    return %c0_i32, %c0_i32_0, %c0_i32_1 : i32, i32, i32
  }
  func.func @transform_16(%arg0: i32) -> (i32, i32) {
    %c0_i32 = arith.constant 0 : i32
    %c0_i32_0 = arith.constant 0 : i32
    %c0_i32_1 = arith.constant 0 : i32
    return %c0_i32, %c0_i32_0 : i32, i32
  }
  func.func @transform_17(%arg0: i32) -> (i32, i32) {
    %c0_i32 = arith.constant 0 : i32
    %c0_i32_0 = arith.constant 0 : i32
    %c0_i32_1 = arith.constant 0 : i32
    return %c0_i32, %c0_i32_0 : i32, i32
  }
  func.func @transform_18(%arg0: i32) -> (i32, i32) {
    %c0_i32 = arith.constant 0 : i32
    %c0_i32_0 = arith.constant 0 : i32
    %c0_i32_1 = arith.constant 0 : i32
    return %c0_i32, %c0_i32_0 : i32, i32
  }
}

</mosaic_0001>

<bundles_post_ra>
// kernel: tpu_custom_call.1
= control target key start
LH: loop header
LB: loop body
LE: loop exit
PB: predicated region body
PF: predicated region fallthrough
CT: control target
= control target key end

     0   :  { %s2008_s0 = inlined_call_operand.vmem [shape: f32[16,496], index: 0, kind: input, shape index: {}]   ;;  %s2009_s1 = inlined_call_operand.vmem [shape: f32[16,7], index: 1, kind: input, shape index: {}]   ;;  %s2010_s2 = inlined_call_operand.vmem [shape: f32[16,48], index: 2, kind: input, shape index: {}]   ;;  %s2011_s3 = inlined_call_operand.vmem [shape: f32[2,16], index: 3, kind: input, shape index: {}]   ;;  %s2012_s4 = inlined_call_operand.vmem [shape: f32[16,2], index: 4, kind: input, shape index: {}]   ;;  %s2013_s5 = inlined_call_operand.vmem [shape: f32[496,48], index: 5, kind: input, shape index: {}]   ;;  %s2014_s6 = inlined_call_operand.vmem [shape: f32[1,48], index: 6, kind: input, shape index: {}]   ;;  %s2015_s7 = inlined_call_operand.vmem [shape: f32[7,24], index: 7, kind: input, shape index: {}]   ;;  %s2016_s8 = inlined_call_operand.vmem [shape: f32[1,24], index: 8, kind: input, shape index: {}]   ;;  %s2017_s9 = inlined_call_operand.vmem [shape: f32[1,24], index: 9, kind: input, shape index: {}]   ;;  %s2018_s10 = inlined_call_operand.vmem [shape: f32[1,24], index: 10, kind: input, shape index: {}]   ;;  %s2019_s11 = inlined_call_operand.vmem [shape: f32[24,48], index: 11, kind: input, shape index: {}]   ;;  %s2020_s12 = inlined_call_operand.vmem [shape: f32[1,48], index: 12, kind: input, shape index: {}]   ;;  %s2021_s13 = inlined_call_operand.vmem [shape: f32[1,48], index: 13, kind: input, shape index: {}]   ;;  %s2022_s14 = inlined_call_operand.vmem [shape: f32[3,48,48], index: 14, kind: input, shape index: {}]   ;;  %s2023_s15 = inlined_call_operand.vmem [shape: f32[3,1,48], index: 15, kind: input, shape index: {}]   ;;  %s2024_s16 = inlined_call_operand.vmem [shape: f32[48,48], index: 16, kind: input, shape index: {}]   ;;  %s2025_s17 = inlined_call_operand.vmem [shape: f32[1,48], index: 17, kind: input, shape index: {}]   ;;  %s2026_s18 = inlined_call_operand.hbm [shape: f32[16,48], index: 18, kind: output, shape index: {}]  }
   0x1   :  { %2030 = sst [smem:[#allocation5_spill]] %s2008_s0 }
   0x2   :  { %2031 = sst [smem:[#allocation6_spill]] %s2009_s1 }
   0x3   :  { %2032 = sst [smem:[#allocation7_spill]] %s2010_s2 }
   0x4   :  { %v99_v0 = vld [vmem:[%s2013_s5 + $0xf8] sm:$0xff]  ;;  %v1468_v3 = vmov 0.0   ;;  %v98_v4 = vld [vmem:[%s2013_s5 + $0xf0] sm:$0xff]  ;;  %v97_v7 = vld [vmem:[%s2013_s5 + $0xe8] sm:$0xff] }
   0x5   :  { %v83_v1 = vld [vmem:[%s2013_s5 + $0x78] sm:$0xff]  ;;  %1251 = vmatprep.subr.mxu0 %v99_v0  ;;  %219 = vmatprep.subr.mxu1 %v1468_v3  ;;  %v82_v5 = vld [vmem:[%s2013_s5 + $0x70] sm:$0xff]  ;;  %v81_v8 = vld [vmem:[%s2013_s5 + $0x68] sm:$0xff] }
   0x6   :  { %v115_v2 = vld [vmem:[%s2013_s5 + $0x178] sm:$0xff]  ;;  %v114_v6 = vld [vmem:[%s2013_s5 + $0x170] sm:$0xff]  ;;  %1252 = vmatpush3.msra.mxu0 %v83_v1  ;;  %v113_v9 = vld [vmem:[%s2013_s5 + $0x168] sm:$0xff] }
   0x7   :  { %220 = vmatpush1.msra.mxu1 %v115_v2  ;;  %1253 = vmatprep.subr.mxu0 %v98_v4  ;;  %v96_v10 = vld [vmem:[%s2013_s5 + $0xe0] sm:$0xff]  ;;  %v95_v13 = vld [vmem:[%s2013_s5 + $0xd8] sm:$0xff]  ;;  %v94_v16 = vld [vmem:[%s2013_s5 + $0xd0] sm:$0xff] }
   0x8   :  { %221 = vmatprep.subr.mxu1 %v1468_v3  ;;  %1254 = vmatpush3.msra.mxu0 %v82_v5  ;;  %v80_v11 = vld [vmem:[%s2013_s5 + $0x60] sm:$0xff]  ;;  %v79_v14 = vld [vmem:[%s2013_s5 + $0x58] sm:$0xff]  ;;  %v78_v17 = vld [vmem:[%s2013_s5 + $0x50] sm:$0xff] }
   0x9   :  { %222 = vmatpush1.msra.mxu1 %v114_v6  ;;  %1255 = vmatprep.subr.mxu0 %v97_v7  ;;  %v112_v12 = vld [vmem:[%s2013_s5 + $0x160] sm:$0xff]  ;;  %v111_v15 = vld [vmem:[%s2013_s5 + $0x158] sm:$0xff]  ;;  %v110_v18 = vld [vmem:[%s2013_s5 + $0x150] sm:$0xff] }
   0xa   :  { %223 = vmatprep.subr.mxu1 %v1468_v3  ;;  %1256 = vmatpush3.msra.mxu0 %v81_v8  ;;  %v93_v19 = vld [vmem:[%s2013_s5 + $0xc8] sm:$0xff]  ;;  %v92_v22 = vld [vmem:[%s2013_s5 + $0xc0] sm:$0xff]  ;;  %v91_v25 = vld [vmem:[%s2013_s5 + $0xb8] sm:$0xff] }
   0xb   :  { %224 = vmatpush1.msra.mxu1 %v113_v9  ;;  %1257 = vmatprep.subr.mxu0 %v96_v10  ;;  %v77_v20 = vld [vmem:[%s2013_s5 + $0x48] sm:$0xff]  ;;  %v76_v23 = vld [vmem:[%s2013_s5 + $0x40] sm:$0xff]  ;;  %v75_v26 = vld [vmem:[%s2013_s5 + $0x38] sm:$0xff] }
   0xc   :  { %225 = vmatprep.subr.mxu1 %v1468_v3  ;;  %1258 = vmatpush3.msra.mxu0 %v80_v11  ;;  %v109_v21 = vld [vmem:[%s2013_s5 + $0x148] sm:$0xff]  ;;  %v108_v24 = vld [vmem:[%s2013_s5 + $0x140] sm:$0xff]  ;;  %v107_v27 = vld [vmem:[%s2013_s5 + $0x138] sm:$0xff] }
   0xd   :  { %226 = vmatpush1.msra.mxu1 %v112_v12  ;;  %1259 = vmatprep.subr.mxu0 %v95_v13  ;;  %v90_v28 = vld [vmem:[%s2013_s5 + $0xb0] sm:$0xff]  ;;  %v89_v31 = vld [vmem:[%s2013_s5 + $0xa8] sm:$0xff]  ;;  %v88_v34 = vld [vmem:[%s2013_s5 + $0xa0] sm:$0xff] }
   0xe   :  { %227 = vmatprep.subr.mxu1 %v1468_v3  ;;  %1260 = vmatpush3.msra.mxu0 %v79_v14  ;;  %v74_v29 = vld [vmem:[%s2013_s5 + $0x30] sm:$0xff]  ;;  %v73_v32 = vld [vmem:[%s2013_s5 + $0x28] sm:$0xff]  ;;  %v72_v35 = vld [vmem:[%s2013_s5 + $0x20] sm:$0xff] }
   0xf   :  { %228 = vmatpush1.msra.mxu1 %v111_v15  ;;  %1261 = vmatprep.subr.mxu0 %v94_v16  ;;  %v106_v30 = vld [vmem:[%s2013_s5 + $0x130] sm:$0xff]  ;;  %v105_v33 = vld [vmem:[%s2013_s5 + $0x128] sm:$0xff]  ;;  %v104_v36 = vld [vmem:[%s2013_s5 + $0x120] sm:$0xff] }
  0x10   :  { %229 = vmatprep.subr.mxu1 %v1468_v3  ;;  %1262 = vmatpush3.msra.mxu0 %v78_v17  ;;  %v87_v37 = vld [vmem:[%s2013_s5 + $0x98] sm:$0xff]  ;;  %v86_v40 = vld [vmem:[%s2013_s5 + $0x90] sm:$0xff] }
  0x11   :  { %230 = vmatpush1.msra.mxu1 %v110_v18  ;;  %1263 = vmatprep.subr.mxu0 %v93_v19  ;;  %v71_v38 = vld [vmem:[%s2013_s5 + $0x18] sm:$0xff] }
  0x12   :  { %231 = vmatprep.subr.mxu1 %v1468_v3  ;;  %1264 = vmatpush3.msra.mxu0 %v77_v20  ;;  %v103_v39 = vld [vmem:[%s2013_s5 + $0x118] sm:$0xff] }
  0x13   :  { %232 = vmatpush1.msra.mxu1 %v109_v21  ;;  %1265 = vmatprep.subr.mxu0 %v92_v22 }
  0x14   :  { %233 = vmatprep.subr.mxu1 %v1468_v3  ;;  %1266 = vmatpush3.msra.mxu0 %v76_v23 }
  0x15   :  { %234 = vmatpush1.msra.mxu1 %v108_v24  ;;  %1267 = vmatprep.subr.mxu0 %v91_v25 }
  0x16   :  { %235 = vmatprep.subr.mxu1 %v1468_v3  ;;  %1268 = vmatpush3.msra.mxu0 %v75_v26 }
  0x17   :  { %236 = vmatpush1.msra.mxu1 %v107_v27  ;;  %1269 = vmatprep.subr.mxu0 %v90_v28 }
  0x18   :  { %237 = vmatprep.subr.mxu1 %v1468_v3  ;;  %1270 = vmatpush3.msra.mxu0 %v74_v29 }
  0x19   :  { %238 = vmatpush1.msra.mxu1 %v106_v30  ;;  %1271 = vmatprep.subr.mxu0 %v89_v31 }
  0x1a   :  { %239 = vmatprep.subr.mxu1 %v1468_v3  ;;  %1272 = vmatpush3.msra.mxu0 %v73_v32 }
  0x1b   :  { %240 = vmatpush1.msra.mxu1 %v105_v33  ;;  %1273 = vmatprep.subr.mxu0 %v88_v34 }
  0x1c   :  { %241 = vmatprep.subr.mxu1 %v1468_v3  ;;  %1274 = vmatpush3.msra.mxu0 %v72_v35 }
  0x1d   :  { %242 = vmatpush1.msra.mxu1 %v104_v36 }
  0x1e   :  { %23 = vsyncpa [#allocation3], 0  ;;  %1275 = vmatprep.subr.mxu0 %v87_v37  ;;  %243 = vmatprep.subr.mxu1 %v1468_v3  ;;  %v70_v41 = vld [vmem:[%s2013_s5 + $0x10] sm:$0xff]  ;;  %v85_v43 = vld [vmem:[%s2013_s5 + $0x88] sm:$0xff]  ;;  %s2033_s1 = sld [smem:[#allocation5_spill]]  ;;  %vm311_vm0 = vcmask 1046528  }
  0x1f   :  { %v102_v42 = vld [vmem:[%s2013_s5 + $0x110] sm:$0xff]  ;;  %1276 = vmatpush3.msra.mxu0 %v71_v38  ;;  %244 = vmatpush1.msra.mxu1 %v103_v39  ;;  %v69_v44 = vld [vmem:[%s2013_s5 + $0x8] sm:$0xff]  ;;  %v84_v46 = vld [vmem:[%s2013_s5 + $0x80] sm:$0xff]  ;;  %s2034_s21 = sld [smem:[#allocation6_spill]]  ;;  %vm304_vm1 = vcmask 56320   ;;  %vm137_vm2 = vcmask 916480  }
  0x20   :  { %1277 = vmatprep.subr.mxu0 %v86_v40  ;;  %245 = vmatprep.subr.mxu1 %v1468_v3  ;;  %v101_v45 = vld [vmem:[%s2013_s5 + $0x108] sm:$0xff]  ;;  %v68_v47 = vld [vmem:[%s2013_s5] sm:$0xff]  ;;  %v127_v57 = vld [vmem:[%s2013_s5 + $0x1d8] sm:$0xff]  ;;  %vm392_vm3 = vcmask 195584   ;;  %s2035_s22 = sld [smem:[#allocation7_spill]]  ;;  %vm528_vm4 = vcmask 392192  }
  0x21   :  { %1278 = vmatpush3.msra.mxu0 %v70_v41  ;;  %246 = vmatpush1.msra.mxu1 %v102_v42  ;;  %v100_v49 = vld [vmem:[%s2013_s5 + $0x100] sm:$0xff]  ;;  %v129_v52 = vld [vmem:[%s2013_s5 + $0x1e8] sm:$0xff]  ;;  %v126_v59 = vld [vmem:[%s2013_s5 + $0x1d0] sm:$0xff]  ;;  %vm1469_vm5 = vmmov 0   ;;  %vm927_vm7 = vcmask 123904   ;;  %vm939_vm8 = vcmask 130048  }
  0x22   :  { %1279 = vmatprep.subr.mxu0 %v85_v43  ;;  %247 = vmatprep.subr.mxu1 %v1468_v3  ;;  %v296_v51 = vld [vmem:[%s2015_s7] sm:$0x7f]  ;;  %v125_v61 = vld [vmem:[%s2013_s5 + $0x1c8] sm:$0xff]  ;;  %v123_v63 = vld [vmem:[%s2013_s5 + $0x1b8] sm:$0xff]  ;;  %vm1101_vm9 = vcmask 15360   ;;  %vm1108_vm10 = vcmask 1041408  }
  0x23   :  { %1280 = vmatpush3.msra.mxu0 %v69_v44  ;;  %248 = vmatpush1.msra.mxu1 %v101_v45  ;;  %v128_v54 = vld [vmem:[%s2013_s5 + $0x1e0] sm:$0xff]  ;;  %v122_v0 = vld [vmem:[%s2013_s5 + $0x1b0] sm:$0xff]  ;;  %v121_v1 = vld [vmem:[%s2013_s5 + $0x1a8] sm:$0xff]  ;;  %s1470_s0 = smov [#allocation2]  }
  0x24   :  { %v61_v48 = vld [vmem:[%s2033_s1 + $0x8] sm:$0xff]  ;;  %v60_v50 = vld [vmem:[%s2033_s1] sm:$0xff]  ;;  %1281 = vmatprep.subr.mxu0 %v84_v46  ;;  %249 = vmatprep.subr.mxu1 %v1468_v3  ;;  %v63_v58 = vld [vmem:[%s2033_s1 + $0x18] sm:$0xff]  ;;  %s1196_s19 = sshll.u32 %s1470_s0, 4  ;;  %s1197_s19 = int_to_ptr.vmem [resolvable:$true] %s1196_s19 }
  0x25   :  { %1282 = vmatpush3.msra.mxu0 %v68_v47  ;;  %208 = vmatprep.mubr.f32.mxu0 %v61_v48  ;;  %v65_v53 = vld [vmem:[%s2033_s1 + $0x28] sm:$0xff]  ;;  %v64_v55 = vld [vmem:[%s2033_s1 + $0x20] sm:$0xff]  ;;  %v119_v4 = vld [vmem:[%s2013_s5 + $0x198] sm:$0xff]  ;;  %p1451_p1 = scmp.lt.s32.totalorder %s1197_s19, %s1197_s19 }
  0x26   :  { %250 = vmatpush1.msra.mxu1 %v100_v49  ;;  %209 = vmatmul.mubr.f32.vlgmr.msra.gmra.mxu0 %v60_v50  ;;  %v294_v56 = vld [vmem:[%s2034_s21] sm:$0xff]  ;;  %v295_v60 = vld [vmem:[%s2034_s21 + $0x8] sm:$0xff]  ;;  %v118_v5 = vld [vmem:[%s2013_s5 + $0x190] sm:$0xff] }
  0x27   :  { %255 = vmatprep.subr.mxu1 %v1468_v3  ;;  %1336 = vmatprep.subr.msk.mxu0 %vm311_vm0, %v296_v51  ;;  %v124_v62 = vld [vmem:[%s2013_s5 + $0x1c0] sm:$0xff]  ;;  %v117_v6 = vld [vmem:[%s2013_s5 + $0x188] sm:$0xff]  ;;  %v62_v8 = vld [vmem:[%s2033_s1 + $0x10] sm:$0xff] }
  0x28   :  { %256 = vmatpush2.msra.mxu1 %v129_v52  ;;  %213 = vmatprep.mubr.f32.mxu0 %v65_v53  ;;  %v120_v2 = vld [vmem:[%s2013_s5 + $0x1a0] sm:$0xff]  ;;  %v67_v9 = vld [vmem:[%s2033_s1 + $0x38] sm:$0xff]  ;;  %v66_v10 = vld [vmem:[%s2033_s1 + $0x30] sm:$0xff] }
  0x29   :  { %257 = vmatprep.subr.mxu1 %v1468_v3  ;;  %1337 = vmatpush3.msk.msra.mxu0 %vm311_vm0, %v296_v51  ;;  %v116_v7 = vld [vmem:[%s2013_s5 + $0x180] sm:$0xff]  ;;  %v438_v43 = vld [vmem:[%s2019_s11 + $0x10] sm:$0xff]  ;;  %v437_v44 = vld [vmem:[%s2019_s11 + $0x8] sm:$0xff] }
  0x2a   :  { %258 = vmatpush2.msra.mxu1 %v128_v54  ;;  %214 = vmatmul.mubr.f32.gmra.mxu0 %v64_v55  ;;  %v1210_v18 = vld [vmem:[%s2016_s8] ss:$0 sm:$0xff] }
  0x2b   :  { %259 = vmatprep.subr.mxu1 %v1468_v3  ;;  %1338 = vmatprep.mubr.msk.f32.mxu0 %vm304_vm1, %v294_v56  ;;  %v1207_v24 = vld [vmem:[%s2014_s6] ss:$0 sm:$0xff] }
  0x2c   :  { %260 = vmatpush2.msra.mxu1 %v127_v57  ;;  %1208 = vmatprep.mubr.msk.f32.mxu1 %vm137_vm2, %v63_v58  ;;  %v436_v45 = vld [vmem:[%s2019_s11] sm:$0xff] }
  0x2d   :  { %261 = vmatprep.subr.mxu1 %v1468_v3  ;;  %1341 = vmatprep.subr.mxu0 %v438_v43  ;;  %v1214_v53 = vld [vmem:[%s2017_s9] ss:$0 sm:$0xff] }
  0x2e   :  { %262 = vmatpush2.msra.mxu1 %v126_v59  ;;  %1339 = vmatmul.mubr.msk.f32.vlgmr.msra.gmra.mxu0 %vm304_vm1, %v295_v60  ;;  %v1215_v55 = vld [vmem:[%s2018_s10] ss:$0 sm:$0xff] }
  0x2f   :  { %263 = vmatprep.subr.mxu1 %v1468_v3  ;;  %1342 = vmatpush3.msra.mxu0 %v438_v43 }
  0x30   :  { %264 = vmatpush2.msra.mxu1 %v125_v61  ;;  %1343 = vmatprep.subr.mxu0 %v437_v44 }
  0x31   :  { %265 = vmatprep.subr.mxu1 %v1468_v3  ;;  %1344 = vmatpush3.msra.mxu0 %v437_v44 }
  0x32   :  { %266 = vmatpush2.msra.mxu1 %v124_v62  ;;  %1345 = vmatprep.subr.mxu0 %v436_v45 }
  0x33   :  { %267 = vmatprep.subr.mxu1 %v1468_v3  ;;  %1346 = vmatpush3.msra.mxu0 %v436_v45 }
  0x34   :  { %268 = vmatpush2.msra.mxu1 %v123_v63  ;;  %1350 = vmatprep.subr.mxu0 %v1468_v3  ;;  %v523_v63 = vld [vmem:[%s2035_s22 + $0x8] sm:$0xff] }
  0x35   :  { %269 = vmatprep.subr.mxu1 %v1468_v3 }
  0x36   :  { %270 = vmatpush2.msra.mxu1 %v122_v0 }
  0x37   :  { %271 = vmatprep.subr.mxu1 %v1468_v3 }
  0x38   :  { %272 = vmatpush2.msra.mxu1 %v121_v1 }
  0x39   :  { %273 = vmatprep.subr.mxu1 %v1468_v3 }
  0x3a   :  { %274 = vmatpush2.msra.mxu1 %v120_v2  ;;  %v522_v2 = vld [vmem:[%s2035_s22] sm:$0xff] }
  0x3b   :  { %275 = vmatprep.subr.mxu1 %v1468_v3 }
  0x3c   :  { %276 = vmatpush2.msra.mxu1 %v119_v4 }
  0x3d   :  { %277 = vmatprep.subr.mxu1 %v1468_v3 }
  0x3e   :  { %278 = vmatpush2.msra.mxu1 %v118_v5 }
  0x3f   :  { %279 = vmatprep.subr.mxu1 %v1468_v3 }
  0x40   :  { %280 = vmatpush2.msra.mxu1 %v117_v6 }
  0x41   :  { %281 = vmatprep.subr.mxu1 %v1468_v3 }
  0x42   :  { %282 = vmatpush2.msra.mxu1 %v116_v7 }
  0x43   :  { %284 = vmatmul.mubr.f32.vlgmr.msra.gmra.mxu1 %v62_v8 }
  0x44   :  { %1209 = vmatprep.mubr.msk.f32.mxu1 %vm137_vm2, %v67_v9 }
  0x47   :  { %289 = vmatmul.mubr.f32.gmra.mxu1 %v66_v10 }
  0xe6   :  { %v1283_v11 = vpop.f32.mrf.mxu0 }
  0xe8   :  { %v1284_v12 = vpop.f32.mrf.mxu0 }
  0xe9   :  { %v1285_v13 = vadd.f32 %v1284_v12, %v1283_v11 }
  0xea   :  { %v1286_v14 = vpop.f32.mrf.mxu0 }
  0xeb   :  { %v211_v25 = vadd.f32 %v1285_v13, %v1207_v24 }
  0xec   :  { %v1287_v15 = vpop.f32.mrf.mxu0 }
  0xed   :  { %v1288_v16 = vadd.f32 %v1287_v15, %v1286_v14 }
  0xee   :  { %v1340_v17 = vpop.f32.mrf.mxu0 }
  0xef   :  { %v387_v21 = vadd.f32 %v1340_v17, %v1210_v18  ;;  %v216_v29 = vadd.f32 %v1288_v16, %v1207_v24  ;;  %v1235_v24 = vld [vmem:[%s2022_s14 + $0x78] sm:$0xff] }
  0xf0   :  { %v381_v19 = vpop.f32.mrf.mxu0 }
  0xf1   :  { %v382_v20 = vadd.f32 %v1210_v18, %v381_v19  ;;  %v396_v23 = vsel %vm392_vm3, %v387_v21, 0.0  ;;  %v577_v19 = vld [vmem:[%s2022_s14 + $0x28] sm:$0xff] }
  0xf3   :  { %v393_v22 = vsel %vm392_vm3, %v382_v20, 0.0 }
  0xf4   :  { %394 = vadd.xlane.f32.xlu0 %v393_v22  ;;  %v1236_v22 = vld [vmem:[%s2022_s14 + $0x80] sm:$0xff] }
  0xf8   :  { %397 = vadd.xlane.f32.xlu0 %v396_v23  ;;  %v575_v23 = vld [vmem:[%s2022_s14 + $0x18] sm:$0xff] }
 0x103   :  { %v285_v26 = vpop.f32.mrf.mxu1 }
 0x104   :  { %v286_v27 = vadd.f32 %v285_v26, %v211_v25  ;;  %v574_v25 = vld [vmem:[%s2022_s14 + $0x10] sm:$0xff] }
 0x105   :  { %v287_v28 = vpop.f32.mrf.mxu1  ;;  %v1234_v26 = vld [vmem:[%s2022_s14 + $0x70] sm:$0xff] }
 0x106   :  { %v1233_v28 = vld [vmem:[%s2022_s14 + $0x68] sm:$0xff] }
 0x107   :  { %v290_v30 = vpop.f32.mrf.mxu1 }
 0x108   :  { %v291_v31 = vadd.f32 %v290_v30, %v216_v29  ;;  %v572_v29 = vld [vmem:[%s2022_s14] sm:$0xff]  ;;  %v1227_v30 = vld [vmem:[%s2022_s14 + $0x58] sm:$0xff] }
 0x109   :  { %v292_v32 = vpop.f32.mrf.mxu1 }
 0x17d   :  { %v395_v33 = vpop.xlane.xlu0 %394 }
 0x17e   :  { %v400_v34 = vmul.f32 0.041666668, %v395_v33 }
 0x180   :  { %v402_v35 = vsub.f32 %v382_v20, %v400_v34  ;;  %v1237_v20 = vld [vmem:[%s2022_s14 + $0x88] sm:$0xff] }
 0x181   :  { %v398_v36 = vpop.xlane.xlu0 %397  ;;  %1380 = vmatprep.subr.mxu1 %v1237_v20 }
 0x182   :  { %v401_v37 = vmul.f32 0.041666668, %v398_v36  ;;  %v404_v38 = vmul.f32 %v402_v35, %v402_v35  ;;  %1381 = vmatpush3.msra.mxu1 %v1237_v20  ;;  %v1014_v20 = vld [vmem:[%s2024_s16 + $0x8] sm:$0xff] }
 0x183   :  { %1382 = vmatprep.subr.mxu1 %v1236_v22 }
 0x184   :  { %v403_v39 = vsub.f32 %v387_v21, %v401_v37  ;;  %v406_v40 = vsel %vm392_vm3, %v404_v38, 0.0  ;;  %v576_v21 = vld [vmem:[%s2022_s14 + $0x20] sm:$0xff]  ;;  %1383 = vmatpush3.msra.mxu1 %v1236_v22 }
 0x185   :  { %407 = vadd.xlane.f32.xlu1 %v406_v40  ;;  %1384 = vmatprep.subr.mxu1 %v1235_v24 }
 0x186   :  { %v405_v41 = vmul.f32 %v403_v39, %v403_v39  ;;  %1385 = vmatpush3.msra.mxu1 %v1235_v24  ;;  %v1013_v24 = vld [vmem:[%s2024_s16] sm:$0xff] }
 0x187   :  { %1386 = vmatprep.subr.mxu1 %v1234_v26 }
 0x188   :  { %v409_v42 = vsel %vm392_vm3, %v405_v41, 0.0  ;;  %1387 = vmatpush3.msra.mxu1 %v1234_v26 }
 0x189   :  { %410 = vadd.xlane.f32.xlu1 %v409_v42  ;;  %1388 = vmatprep.subr.mxu1 %v1233_v28  ;;  %v1219_v42 = vld [vmem:[%s2021_s13] ss:$0 sm:$0xff] }
 0x18a   :  { %1389 = vmatpush3.msra.mxu1 %v1233_v28 }
 0x20e   :  { %v408_v46 = vpop.xlane.xlu1 %407 }
 0x20f   :  { %v412_v47 = vmul.f32 0.041666668, %v408_v46 }
 0x211   :  { %v414_v48 = vadd.f32 1e-05, %v412_v47 }
 0x212   :  { %v411_v49 = vpop.xlane.xlu1 %410 }
 0x213   :  { %1434 = vrsqrt.f32 %v414_v48  ;;  %v413_v50 = vmul.f32 0.041666668, %v411_v49  ;;  %v1226_v49 = vld [vmem:[%s2022_s14 + $0x50] sm:$0xff] }
 0x215   :  { %v415_v51 = vadd.f32 1e-05, %v413_v50  ;;  %v1225_v50 = vld [vmem:[%s2022_s14 + $0x48] sm:$0xff] }
 0x217   :  { %1436 = vrsqrt.f32 %v415_v51  ;;  %v1224_v51 = vld [vmem:[%s2022_s14 + $0x40] sm:$0xff] }
 0x220   :  { %v1435_v52 = vpop.eup %1434 }
 0x221   :  { %v418_v54 = vmul.f32 %v1435_v52, %v402_v35  ;;  %v1223_v52 = vld [vmem:[%s2022_s14 + $0x38] sm:$0xff] }
 0x223   :  { %v426_v56 = vmul.f32 %v1214_v53, %v418_v54 }
 0x224   :  { %v1437_v57 = vpop.eup %1436 }
 0x225   :  { %v419_v58 = vmul.f32 %v1437_v57, %v403_v39  ;;  %v434_v59 = vadd.f32 %v1215_v55, %v426_v56  ;;  %v1218_v39 = vld [vmem:[%s2020_s12] ss:$0 sm:$0xff]  ;;  %v1229_v56 = vld [vmem:[%s2023_s15 + $0x1] ss:$0 sm:$0xff] }
 0x227   :  { %v427_v60 = vmul.f32 %v1214_v53, %v419_v58  ;;  %1347 = vmatprep.mubr.msk.f32.mxu0 %vm392_vm3, %v434_v59  ;;  %v1222_v53 = vld [vmem:[%s2022_s14 + $0x30] sm:$0xff] }
 0x229   :  { %v435_v61 = vadd.f32 %v1215_v55, %v427_v60 }
 0x22b   :  { %1348 = vmatmul.mubr.msk.f32.vlgmr.msra.gmra.mxu0 %vm392_vm3, %v435_v61  ;;  %v1220_v61 = vld [vmem:[%s2023_s15] ss:$0 sm:$0xff] }
 0x22c   :  { %1351 = vmatpush3.msra.mxu0 %v577_v19  ;;  %1362 = vmatprep.mubr.msk.f32.mxu0 %vm1469_vm5, %v1468_v3  ;;  %v1015_v19 = vld [vmem:[%s2024_s16 + $0x10] sm:$0xff] }
 0x22d   :  { %1352 = vmatprep.subr.mxu0 %v1468_v3 }
 0x22e   :  { %1353 = vmatpush3.msra.mxu0 %v576_v21 }
 0x22f   :  { %1354 = vmatprep.subr.mxu0 %v1468_v3 }
 0x230   :  { %1355 = vmatpush3.msra.mxu0 %v575_v23 }
 0x231   :  { %1356 = vmatprep.subr.mxu0 %v1468_v3 }
 0x232   :  { %1357 = vmatpush3.msra.mxu0 %v574_v25 }
 0x233   :  { %1358 = vmatprep.subr.mxu0 %v1468_v3 }
 0x2eb   :  { %v1349_v62 = vpop.f32.mrf.mxu0 }
 0x2ec   :  { %v521_v0 = vadd.f32 %v1349_v62, %v291_v31  ;;  %v1232_v31 = vld [vmem:[%s2022_s14 + $0x60] sm:$0xff] }
 0x2ed   :  { %v511_v1 = vpop.f32.mrf.mxu0  ;;  %1390 = vmatprep.subr.mxu1 %v1232_v31 }
 0x2ee   :  { %v520_v4 = vadd.f32 %v511_v1, %v286_v27  ;;  %v525_v5 = vadd.f32 %v523_v63, %v521_v0  ;;  %v573_v27 = vld [vmem:[%s2022_s14 + $0x8] sm:$0xff]  ;;  %1391 = vmatpush3.msra.mxu1 %v1232_v31  ;;  %v1239_v63 = vld [vmem:[%s2023_s15 + $0x2] ss:$0 sm:$0xff] }
 0x2ef   :  { %1359 = vmatpush3.msra.mxu0 %v573_v27  ;;  %1409 = vmatprep.subr.mxu1 %v1468_v3  ;;  %v1099_v27 = vld [vmem:[%s2012_s4] sm:$0xff]  ;;  %v1100_v31 = vld [vmem:[%s2012_s4 + $0x8] sm:$0xff] }
 0x2f0   :  { %v532_v6 = vsel %vm528_vm4, %v525_v5, 0.0  ;;  %v524_v7 = vadd.f32 %v522_v2, %v520_v4  ;;  %1360 = vmatprep.subr.mxu0 %v1468_v3 }
 0x2f1   :  { %533 = vadd.xlane.f32.xlu0 %v532_v6  ;;  %1361 = vmatpush3.msra.mxu0 %v572_v29 }
 0x2f2   :  { %v529_v8 = vsel %vm528_vm4, %v524_v7, 0.0  ;;  %1365 = vmatprep.subr.mxu0 %v1227_v30 }
 0x2f3   :  { %530 = vadd.xlane.f32.xlu1 %v529_v8 }
 0x37a   :  { %v534_v9 = vpop.xlane.xlu0 %533 }
 0x37b   :  { %v537_v10 = vmul.f32 0.020833334, %v534_v9 }
 0x37c   :  { %v531_v11 = vpop.xlane.xlu1 %530 }
 0x37d   :  { %v539_v12 = vsub.f32 %v525_v5, %v537_v10  ;;  %v536_v13 = vmul.f32 0.020833334, %v531_v11  ;;  %v924_v5 = vld [vmem:[%s2011_s3] sm:$0x3] }
 0x37e   :  { %vm925_vm6 = vcmp.gt.f32.partialorder %v924_v5, 0.5 }
 0x37f   :  { %v538_v14 = vsub.f32 %v524_v7, %v536_v13  ;;  %v541_v15 = vmul.f32 %v539_v12, %v539_v12 }
 0x381   :  { %v545_v16 = vsel %vm528_vm4, %v541_v15, 0.0  ;;  %v540_v17 = vmul.f32 %v538_v14, %v538_v14 }
 0x382   :  { %546 = vadd.xlane.f32.xlu0 %v545_v16  ;;  %v1018_v16 = vld [vmem:[%s2024_s16 + $0x28] sm:$0xff] }
 0x383   :  { %v542_v18 = vsel %vm528_vm4, %v540_v17, 0.0  ;;  %v1017_v17 = vld [vmem:[%s2024_s16 + $0x20] sm:$0xff] }
 0x384   :  { %543 = vadd.xlane.f32.xlu1 %v542_v18  ;;  %v1016_v18 = vld [vmem:[%s2024_s16 + $0x18] sm:$0xff] }
 0x40b   :  { %v547_v32 = vpop.xlane.xlu0 %546 }
 0x40c   :  { %v549_v33 = vmul.f32 0.020833334, %v547_v32 }
 0x40d   :  { %v544_v34 = vpop.xlane.xlu1 %543 }
 0x40e   :  { %v551_v35 = vadd.f32 1e-05, %v549_v33  ;;  %v548_v36 = vmul.f32 0.020833334, %v544_v34 }
 0x410   :  { %1438 = vrsqrt.f32 %v551_v35  ;;  %v550_v37 = vadd.f32 1e-05, %v548_v36 }
 0x412   :  { %1440 = vrsqrt.f32 %v550_v37 }
 0x41d   :  { %v1439_v38 = vpop.eup %1438 }
 0x41e   :  { %v555_v40 = vmul.f32 %v1439_v38, %v539_v12 }
 0x41f   :  { %v1441_v41 = vpop.eup %1440 }
 0x420   :  { %v563_v43 = vmul.f32 %v1218_v39, %v555_v40  ;;  %v554_v44 = vmul.f32 %v1441_v41, %v538_v14 }
 0x422   :  { %v1914_v45 = vadd.f32 %v1219_v42, %v563_v43  ;;  %v562_v46 = vmul.f32 %v1218_v39, %v554_v44 }
 0x424   :  { %v586_v47 = vrot.slane %v1914_v45, 6  ;;  %v1917_v48 = vadd.f32 %v1219_v42, %v562_v46 }
 0x426   :  { %1363 = vmatmul.mubr.msk.f32.vlgmr.msra.gmra.mxu0 %vm528_vm4, %v586_v47  ;;  %1392 = vmatprep.mubr.msk.f32.mxu1 %vm528_vm4, %v1917_v48 }
 0x427   :  { %1366 = vmatpush3.msra.mxu0 %v1227_v30  ;;  %1377 = vmatprep.mubr.msk.f32.mxu0 %vm528_vm4, %v1917_v48 }
 0x428   :  { %1367 = vmatprep.subr.mxu0 %v1226_v49  ;;  %1393 = vmatmul.mubr.msk.f32.vlgmr.msra.gmra.mxu1 %vm528_vm4, %v1914_v45 }
 0x429   :  { %1368 = vmatpush3.msra.mxu0 %v1226_v49  ;;  %1421 = vmatprep.mubr.msk.f32.mxu1 %vm1469_vm5, %v1468_v3 }
 0x42a   :  { %1369 = vmatprep.subr.mxu0 %v1225_v50  ;;  %1410 = vmatpush3.msra.mxu1 %v1018_v16 }
 0x42b   :  { %1370 = vmatpush3.msra.mxu0 %v1225_v50  ;;  %1411 = vmatprep.subr.mxu1 %v1468_v3 }
 0x42c   :  { %1371 = vmatprep.subr.mxu0 %v1224_v51  ;;  %1412 = vmatpush3.msra.mxu1 %v1017_v17 }
 0x42d   :  { %1372 = vmatpush3.msra.mxu0 %v1224_v51  ;;  %1413 = vmatprep.subr.mxu1 %v1468_v3 }
 0x42e   :  { %1373 = vmatprep.subr.mxu0 %v1223_v52  ;;  %1414 = vmatpush3.msra.mxu1 %v1016_v18 }
 0x42f   :  { %1374 = vmatpush3.msra.mxu0 %v1223_v52  ;;  %1415 = vmatprep.subr.mxu1 %v1468_v3 }
 0x430   :  { %1375 = vmatprep.subr.mxu0 %v1222_v53  ;;  %1416 = vmatpush3.msra.mxu1 %v1015_v19 }
 0x431   :  { %1376 = vmatpush3.msra.mxu0 %v1222_v53  ;;  %1417 = vmatprep.subr.mxu1 %v1468_v3 }
 0x432   :  { %1378 = vmatmul.mubr.msk.f32.vlgmr.msra.gmra.mxu0 %vm528_vm4, %v1914_v45  ;;  %1395 = vmatprep.subr.mxu0 %v1468_v3 }
 0x433   :  { %1399 = vmatprep.mubr.msk.f32.mxu0 %vm1469_vm5, %v1468_v3  ;;  %1418 = vmatpush3.msra.mxu1 %v1014_v20 }
 0x434   :  { %1419 = vmatprep.subr.mxu1 %v1468_v3 }
 0x435   :  { %1420 = vmatpush3.msra.mxu1 %v1013_v24 }
 0x4e6   :  { %v655_v54 = vpop.f32.mrf.mxu0 }
 0x4e7   :  { %v656_v0 = vadd.f32 %v1220_v61, %v655_v54 }
 0x4e8   :  { %v1364_v55 = vpop.f32.mrf.mxu0  ;;  %v1394_v60 = vpop.f32.mrf.mxu1 }
 0x4e9   :  { %v841_v2 = vadd.f32 %v1394_v60, %v1239_v63 }
 0x4ea   :  { %v835_v1 = vpop.f32.mrf.mxu1 }
 0x4eb   :  { %v836_v4 = vadd.f32 %v1239_v63, %v835_v1 }
 0x4f2   :  { %v1379_v57 = vpop.f32.mrf.mxu0 }
 0x4f3   :  { %v751_v58 = vadd.f32 %v1379_v57, %v1229_v56 }
 0x4f4   :  { %v745_v59 = vpop.f32.mrf.mxu0 }
 0x4f5   :  { %1396 = vmatpush3.xpose.msk.msra.mxu0 %vm528_vm4, %v751_v58  ;;  %v746_v62 = vadd.f32 %v1229_v56, %v745_v59 }
 0x4f6   :  { %1397 = vmatprep.subr.mxu0 %v1468_v3 }
 0x4f9   :  { %1398 = vmatpush3.xpose.msk.msra.mxu0 %vm528_vm4, %v746_v62 }
 0x4fa   :  { %1402 = vmatprep.subr.mxu0 %v1468_v3 }
 0x4fc   :  { %1400 = vmatmul.mubr.msk.f32.vlgmr.msra.gmra.mxu0 %vm528_vm4, %v656_v0 }
 0x4fd   :  { %1403 = vmatpush3.msra.mxu0 %v841_v2  ;;  %1406 = vmatprep.mubr.msk.f32.mxu0 %vm1469_vm5, %v1468_v3 }
 0x4fe   :  { %1404 = vmatprep.subr.mxu0 %v1468_v3  ;;  %v1246_v3 = vld [vmem:[%s2025_s17] ss:$0 sm:$0xff]  ;;  %s1446_s17 = scalar_lea.vmem %s1197_s19, 256 }
 0x4ff   :  { %1405 = vmatpush3.msra.mxu0 %v836_v4  ;;  %p1447_p0 = scmp.ne.s32.totalorder %s1197_s19, %s1446_s17  ;;  %p1452_p2 = scmp.lt.s32.totalorder %s1446_s17, %s1446_s17 }
 0x501   :  { %p1453_p3 = por %p1452_p2, %p1451_p1 }
 0x503   :  { %p1454_p4 = pnand %p1453_p3, %p1447_p0 }
 0x5bc   :  { %v919_v6 = vpop.f32.mrf.mxu0 }
 0x5bd   :  { %v923_v7 = vmul.f32 0.14433756, %v919_v6 }
 0x5be   :  { %v1401_v8 = vpop.f32.mrf.mxu0 }
 0x5bf   :  { %v926_v9 = vsel %vm925_vm6, %v923_v7, -1e+30 }
 0x5c0   :  { %v928_v10 = vsel %vm927_vm7, %v926_v9, -inf }
 0x5c1   :  { %929 = vmax.xlane.f32.xlu0 %v928_v10 }
 0x64a   :  { %v930_v11 = vpop.xlane.xlu0 %929 }
 0x64b   :  { %v931_v12 = vsub.f32 %v926_v9, %v930_v11 }
 0x64d   :  { %v932_v13 = vmul.f32 1.442695, %v931_v12 }
 0x64f   :  { %1442 = vpow2.f32 %v932_v13 }
 0x65c   :  { %v1443_v14 = vpop.eup %1442 }
 0x65d   :  { %v934_v15 = vsel %vm927_vm7, %v1443_v14, 0.0 }
 0x65e   :  { %935 = vadd.xlane.f32.xlu1 %v934_v15 }
 0x6e7   :  { %v936_v21 = vpop.xlane.xlu1 %935 }
 0x6e8   :  { %1444 = vrcp.f32 %v936_v21 }
 0x6f5   :  { %v1445_v22 = vpop.eup %1444 }
 0x6f6   :  { %v938_v23 = vmul.f32 %v1445_v22, %v1443_v14 }
 0x6f8   :  { %1407 = vmatmul.mubr.msk.f32.vlgmr.msra.gmra.mxu0 %vm939_vm8, %v938_v23 }
 0x6f9   :  { %1426 = vmatprep.mubr.msk.f32.mxu0 %vm1101_vm9, %v1099_v27 }
 0x7b8   :  { %v1009_v25 = vpop.f32.mrf.mxu0 }
 0x7b9   :  { %1422 = vmatmul.mubr.msk.f32.vlgmr.msra.gmra.mxu1 %vm528_vm4, %v1009_v25 }
 0x7ba   :  { %v1408_v26 = vpop.f32.mrf.mxu0 }
 0x879   :  { %v1095_v28 = vpop.f32.mrf.mxu1 }
 0x87a   :  { %v1096_v29 = vadd.f32 %v1246_v3, %v1095_v28 }
 0x87b   :  { %v1423_v30 = vpop.f32.mrf.mxu1 }
 0x87c   :  { %1424 = vmatprep.subr.msk.mxu0 %vm1108_vm10, %v1096_v29 }
 0x87d   :  { %1425 = vmatpush3.msk.msra.mxu0 %vm1108_vm10, %v1096_v29 }
 0x87e   :  { %1427 = vmatmul.mubr.msk.f32.vlgmr.msra.gmra.mxu0 %vm1101_vm9, %v1100_v31 }
 0x93e   :  { %v1428_v32 = vpop.f32.mrf.mxu0 }
 0x93f   :  { %v1188_v33 = vadd.f32 %v1428_v32, %v1914_v45 }
 0x940   :  { %v1178_v34 = vpop.f32.mrf.mxu0 }
 0x941   :  { %1190 = vst.msk [vmem:[#allocation2 + $0x8] sm:$0xff] %vm528_vm4, %v1188_v33  ;;  %v1187_v35 = vadd.f32 %v1178_v34, %v1917_v48 }
 0x943   :  { %1189 = vst.msk [vmem:[#allocation2] sm:$0xff] %vm528_vm4, %v1187_v35 }
 0x944   :  { %1457 = shalt.err (!%p1454_p4)
}
 0x945   :  { %s1471_s4 = smov 128   ;;  %s1472_s11 = smov 8  }
 0x946   :  { %1202 = dma.vmem_to_hbm [thread:$0]  %s1197_s19, 256, %s2026_s18, [#allocation3], %s1471_s4, %s1471_s4, %s1472_s11  }
 0x947   :  { %1466 = dma.done.wait [#allocation3], 256  }
 0x948   :  { %1467 = vsyncadd [#allocation3], 4294967040 }
 0x949   :  { %1206 = vsyncpa [#allocation3], 1 }

</bundles_post_ra>
